<compile_context>
chip_gen: v7x
topology: tpu7x:2x2x1
jax: 0.10.0
libtpu: 0.0.40
codegen_flags: <defaults>
</compile_context>

<pallas_src>
import functools

import jax
import jax.numpy as jnp
from jax import lax
from jax.experimental import pallas as pl
from jax.experimental.pallas import tpu as pltpu


def _round_up(x, m):
    return (x + m - 1) // m * m


def _pick_lane_tile(out_pad, max_lanes=512):
    """Largest multiple of 128 that divides out_pad and is <= max_lanes."""
    units = out_pad // 128
    for u in range(min(units, max(max_lanes // 128, 1)), 0, -1):
        if units % u == 0:
            return 128 * u
    return 128


def _elementwise_kernel(elementwise_type, fuse_ds, use_batchnorm, use_relu,
                        use_dropout, dropout_rate, bn_eps, *refs):
    """One output-column tile: Linear(s) -> +x_empty -> reduce -> BN -> ReLU -> dropout."""
    it = iter(refs)
    xd_ref = next(it); wd_ref = next(it); bd_ref = next(it)
    if not fuse_ds:
        xs_ref = next(it); ws_ref = next(it); bs_ref = next(it)
    xi_ref = next(it); xe_ref = next(it)
    gamma_ref = next(it); beta_ref = next(it)
    rand_ref = next(it) if use_dropout else None
    o_ref = next(it)

    xe = xe_ref[...].astype(jnp.float32)
    xi = xi_ref[...].astype(jnp.float32)

    d = jnp.dot(xd_ref[...], wd_ref[...], preferred_element_type=jnp.float32)
    if fuse_ds:
        # 'sum'/'avg': both Linears were fused into a single matmul in the
        # wrapper (xd|xs along K, wd;ws stacked, bd+bs folded into bd).
        # sum = (xd@wd + bd + xe) + (xs@ws + bs + xe) + (xi + xe)
        final = d + bd_ref[...] + xi + 3.0 * xe
        if elementwise_type == 'avg':
            final = final * (1.0 / 3.0)
    else:
        d = d + (bd_ref[...] + xe)
        s = jnp.dot(xs_ref[...], ws_ref[...],
                    preferred_element_type=jnp.float32)
        s = s + (bs_ref[...] + xe)
        i = xi + xe
        if elementwise_type == 'min':
            final = jnp.minimum(jnp.minimum(d, s), i)
        elif elementwise_type == 'max':
            final = jnp.maximum(jnp.maximum(d, s), i)
        elif elementwise_type == 'innerproduct':
            final = d * s * i
        elif elementwise_type == 'avg':
            final = (d + s + i) * (1.0 / 3.0)
        else:  # 'sum' and fallback
            final = d + s + i

    out = final
    if use_batchnorm:
        # PyTorch BatchNorm1d training mode: batch statistics, biased variance.
        # Reduction is over the batch (sublane) axis only, so it is exact under
        # per-output-column tiling.
        mean = jnp.mean(out, axis=0, keepdims=True)
        var = jnp.mean((out - mean) ** 2, axis=0, keepdims=True)
        out = (out - mean) * lax.rsqrt(var + bn_eps)
        out = out * gamma_ref[...] + beta_ref[...]
    if use_relu:
        out = jnp.maximum(out, 0.0)
    if use_dropout:
        # Bernoulli keep with prob (1 - p), scaled by 1/(1 - p)  (== torch
        # training dropout).  Mask randomness comes from a tiled f32 uniform
        # input, so every grid program uses an independent slice of the stream.
        keep = rand_ref[...] >= dropout_rate
        out = jnp.where(keep, out * (1.0 / (1.0 - dropout_rate)), 0.0)

    o_ref[...] = out.astype(o_ref.dtype)


def elementwise_forward(x_dense, x_sparse, x_inner, x_empty, params,
                        elementwise_type='innerproduct',
                        use_batchnorm=True, use_relu=True, use_dropout=True,
                        dropout_rate=0.5, dropout_key=None, bn_eps=1e-5,
                        compute_dtype=jnp.bfloat16, out_dtype=jnp.float32,
                        max_lane_tile=512):
    """Fused ElementWise-block forward.

    Inputs mirror the PyTorch `inputs` list:
      (x_empty, 0), (x_dense, 1), (x_sparse, 2), (x_inner, 3)
    """
    wd, bd = params['wd'], params['bd']
    ws, bs = params['ws'], params['bs']
    gamma, beta = params['gamma'], params['beta']

    B = x_dense.shape[0]
    OUT = wd.shape[1]
    OUT_pad = _round_up(OUT, 128)            # lane-dense output tiles
    TN = _pick_lane_tile(OUT_pad, max_lane_tile)
    n_tiles = OUT_pad // TN

    cd = compute_dtype
    # glue: flatten 3-D raw features, feed bf16 activations / weights.
    xd = x_dense.reshape(B, -1).astype(cd)
    xs = x_sparse.reshape(B, -1).astype(cd)

    def pad_cols(a, dtype):
        a = a.astype(dtype)
        if a.shape[-1] == OUT_pad:
            return a
        return jnp.pad(a, ((0, 0), (0, OUT_pad - a.shape[-1])))

    xi = pad_cols(x_inner, cd)
    xe = pad_cols(x_empty, cd)
    wd_p = pad_cols(wd, cd)
    ws_p = pad_cols(ws, cd)
    bd_p = pad_cols(bd, jnp.float32)
    bs_p = pad_cols(bs, jnp.float32)
    gamma_p = pad_cols(gamma, jnp.float32)
    beta_p = pad_cols(beta, jnp.float32)

    fuse_ds = elementwise_type in ('sum', 'avg')
    if fuse_ds:
        # single MXU matmul for the additive reductions.
        xd = jnp.concatenate([xd, xs], axis=1)
        wd_p = jnp.concatenate([wd_p, ws_p], axis=0)
        bd_p = bd_p + bs_p

    inputs = [xd, wd_p, bd_p]
    in_specs = [
        pl.BlockSpec(xd.shape, lambda j: (0, 0)),              # resident LHS
        pl.BlockSpec((wd_p.shape[0], TN), lambda j: (0, j)),
        pl.BlockSpec((1, TN), lambda j: (0, j)),
    ]
    if not fuse_ds:
        inputs += [xs, ws_p, bs_p]
        in_specs += [
            pl.BlockSpec(xs.shape, lambda j: (0, 0)),          # resident LHS
            pl.BlockSpec((ws_p.shape[0], TN), lambda j: (0, j)),
            pl.BlockSpec((1, TN), lambda j: (0, j)),
        ]
    inputs += [xi, xe, gamma_p, beta_p]
    in_specs += [
        pl.BlockSpec((B, TN), lambda j: (0, j)),
        pl.BlockSpec((B, TN), lambda j: (0, j)),
        pl.BlockSpec((1, TN), lambda j: (0, j)),
        pl.BlockSpec((1, TN), lambda j: (0, j)),
    ]
    if use_dropout:
        if dropout_key is None:
            dropout_key = jax.random.PRNGKey(0)
        # TODO(synk): dropout keep-prob / scaling matches PyTorch training mode,
        # but the random bit-stream is jax.random, not torch's RNG.
        rand = jax.random.uniform(dropout_key, (B, OUT_pad), jnp.float32)
        inputs.append(rand)
        in_specs.append(pl.BlockSpec((B, TN), lambda j: (0, j)))

    kernel = functools.partial(
        _elementwise_kernel, elementwise_type, fuse_ds, use_batchnorm,
        use_relu, use_dropout, float(dropout_rate), float(bn_eps))

    out = pl.pallas_call(
        kernel,
        out_shape=jax.ShapeDtypeStruct((B, OUT_pad), out_dtype),
        grid_spec=pltpu.PrefetchScalarGridSpec(
            num_scalar_prefetch=0,
            grid=(n_tiles,),
            in_specs=in_specs,
            out_specs=pl.BlockSpec((B, TN), lambda j: (0, j)),
        ),
        compiler_params=pltpu.CompilerParams(
            dimension_semantics=("parallel",)),   # out-column tiles are independent
    )(*inputs)
    return out[:, :OUT]


def _reference_no_dropout(x_dense, x_sparse, x_inner, x_empty, params,
                          elementwise_type, bn_eps, compute_dtype):
    """Pure-JAX reference of the forward (dropout disabled), same bf16 rounding."""
    B = x_dense.shape[0]
    cd = compute_dtype
    xd = x_dense.reshape(B, -1).astype(cd)
    xs = x_sparse.reshape(B, -1).astype(cd)
    xi = x_inner.astype(cd).astype(jnp.float32)
    xe = x_empty.astype(cd).astype(jnp.float32)
    d = jnp.dot(xd, params['wd'].astype(cd),
                preferred_element_type=jnp.float32) + params['bd'] + xe
    s = jnp.dot(xs, params['ws'].astype(cd),
                preferred_element_type=jnp.float32) + params['bs'] + xe
    i = xi + xe
    if elementwise_type == 'avg':
        final = (d + s + i) / 3.0
    elif elementwise_type == 'sum':
        final = d + s + i
    elif elementwise_type == 'min':
        final = jnp.minimum(jnp.minimum(d, s), i)
    elif elementwise_type == 'max':
        final = jnp.maximum(jnp.maximum(d, s), i)
    elif elementwise_type == 'innerproduct':
        final = d * s * i
    else:
        final = d + s + i
    mean = jnp.mean(final, axis=0, keepdims=True)
    var = jnp.mean((final - mean) ** 2, axis=0, keepdims=True)
    out = (final - mean) * lax.rsqrt(var + bn_eps)
    out = out * params['gamma'] + params['beta']
    return jnp.maximum(out, 0.0)


if __name__ == "__main__":
    # Small, forward-consistent shapes.
    B = 8                       # batch_size
    EMB = 8                     # embedding_dim
    N_DENSE = 2                 # num_dense_feats
    N_SPARSE = 4                # num_sparse_feats
    OUT = 32                    # block_out_dim
    DENSE_IN = N_DENSE * EMB    # params['raw_dense_linear']
    SPARSE_IN = N_SPARSE * EMB  # params['raw_sparse_linear']

    key = jax.random.PRNGKey(0)
    ks = jax.random.split(key, 10)

    bd_bound = 1.0 / jnp.sqrt(DENSE_IN)
    bs_bound = 1.0 / jnp.sqrt(SPARSE_IN)
    params = {
        'wd': jax.random.uniform(ks[0], (DENSE_IN, OUT), jnp.float32, -bd_bound, bd_bound),
        'bd': jax.random.uniform(ks[1], (1, OUT), jnp.float32, -bd_bound, bd_bound),
        'ws': jax.random.uniform(ks[2], (SPARSE_IN, OUT), jnp.float32, -bs_bound, bs_bound),
        'bs': jax.random.uniform(ks[3], (1, OUT), jnp.float32, -bs_bound, bs_bound),
        'gamma': jax.random.uniform(ks[4], (1, OUT), jnp.float32, 0.5, 1.5),
        'beta': jax.random.uniform(ks[5], (1, OUT), jnp.float32, -0.5, 0.5),
    }

    # Inputs matching the module's convention: (x_empty,0) (x_dense,1) (x_sparse,2) (x_inner,3)
    x_dense = jax.random.normal(ks[6], (B, N_DENSE, EMB), jnp.float32)
    x_sparse = jax.random.normal(ks[7], (B, N_SPARSE, EMB), jnp.float32)
    x_inner = jax.random.normal(ks[8], (B, OUT), jnp.float32)
    x_empty = jax.random.normal(ks[9], (B, OUT), jnp.float32)

    # 1) Deterministic path (dropout off) vs pure-JAX reference, including the
    #    fused-matmul ('sum') and min/max branches.
    for etype in ('innerproduct', 'sum', 'avg', 'max'):
        out_k = elementwise_forward(
            x_dense, x_sparse, x_inner, x_empty, params,
            elementwise_type=etype, use_dropout=False)
        out_k = jax.block_until_ready(out_k)
        ref = _reference_no_dropout(
            x_dense, x_sparse, x_inner, x_empty, params, etype, 1e-5, jnp.bfloat16)
        assert out_k.shape == (B, OUT)
        assert jnp.allclose(out_k, ref, atol=2e-3, rtol=2e-3), \
            f"{etype} mismatch: {jnp.max(jnp.abs(out_k - ref))}"

    # 2) Full forward including training-mode dropout.
    out = elementwise_forward(
        x_dense, x_sparse, x_inner, x_empty, params,
        elementwise_type='innerproduct', use_dropout=True, dropout_rate=0.5,
        dropout_key=jax.random.PRNGKey(42))
    out = jax.block_until_ready(out)
    assert out.shape == (B, OUT)
    assert bool(jnp.all(jnp.isfinite(out)))

    print("KERNEL_OK")
</pallas_src>

<mosaic_0001>
module attributes {stable_mosaic.version = 11 : i64} {
  func.func @_elementwise_kernel(%arg0: i32, %arg1: memref<8x16xbf16, #tpu.memory_space<vmem>>, %arg2: memref<16x128xbf16, #tpu.memory_space<vmem>>, %arg3: memref<1x128xf32, #tpu.memory_space<vmem>>, %arg4: memref<8x32xbf16, #tpu.memory_space<vmem>>, %arg5: memref<32x128xbf16, #tpu.memory_space<vmem>>, %arg6: memref<1x128xf32, #tpu.memory_space<vmem>>, %arg7: memref<8x128xbf16, #tpu.memory_space<vmem>>, %arg8: memref<8x128xbf16, #tpu.memory_space<vmem>>, %arg9: memref<1x128xf32, #tpu.memory_space<vmem>>, %arg10: memref<1x128xf32, #tpu.memory_space<vmem>>, %arg11: memref<8x128xf32, #tpu.memory_space<vmem>>) attributes {dimension_semantics = [#tpu.dimension_semantics<parallel>], iteration_bounds = array<i64: 1>, scalar_prefetch = 0 : i64, scratch_operands = 0 : i64, tpu.core_type = #tpu.core_type<tc>, window_params = [{pipeline_mode = #tpu.pipeline_mode<synchronous>, transform_indices = @transform_0, window_bounds = array<i64: 8, 16>}, {transform_indices = @transform_1, window_bounds = array<i64: 16, 128>}, {transform_indices = @transform_2, window_bounds = array<i64: 1, 128>}, {pipeline_mode = #tpu.pipeline_mode<synchronous>, transform_indices = @transform_3, window_bounds = array<i64: 8, 32>}, {transform_indices = @transform_4, window_bounds = array<i64: 32, 128>}, {transform_indices = @transform_5, window_bounds = array<i64: 1, 128>}, {transform_indices = @transform_6, window_bounds = array<i64: 8, 128>}, {transform_indices = @transform_7, window_bounds = array<i64: 8, 128>}, {transform_indices = @transform_8, window_bounds = array<i64: 1, 128>}, {transform_indices = @transform_9, window_bounds = array<i64: 1, 128>}, {transform_indices = @transform_10, window_bounds = array<i64: 8, 128>}]} {
    %c0 = arith.constant 0 : index
    %c0_0 = arith.constant 0 : index
    %0 = vector.load %arg8[%c0, %c0_0] : memref<8x128xbf16, #tpu.memory_space<vmem>>, vector<8x128xbf16>
    %1 = arith.extf %0 : vector<8x128xbf16> to vector<8x128xf32>
    %c0_1 = arith.constant 0 : index
    %c0_2 = arith.constant 0 : index
    %2 = vector.load %arg7[%c0_1, %c0_2] : memref<8x128xbf16, #tpu.memory_space<vmem>>, vector<8x128xbf16>
    %3 = arith.extf %2 : vector<8x128xbf16> to vector<8x128xf32>
    %c0_3 = arith.constant 0 : index
    %c0_4 = arith.constant 0 : index
    %4 = vector.load %arg1[%c0_3, %c0_4] : memref<8x16xbf16, #tpu.memory_space<vmem>>, vector<8x16xbf16>
    %c0_5 = arith.constant 0 : index
    %c0_6 = arith.constant 0 : index
    %5 = vector.load %arg2[%c0_5, %c0_6] : memref<16x128xbf16, #tpu.memory_space<vmem>>, vector<16x128xbf16>
    %cst = arith.constant dense<0.000000e+00> : vector<8x128xf32>
    %6 = tpu.matmul %4, %5, %cst {dimension_numbers = #tpu.dot_dimension_numbers<[1], [0], [0], [1], [0, 0, 1, 1], [], []>} : vector<8x16xbf16>, vector<16x128xbf16>, vector<8x128xf32> -> vector<8x128xf32>
    %c0_7 = arith.constant 0 : index
    %c0_8 = arith.constant 0 : index
    %7 = vector.load %arg3[%c0_7, %c0_8] : memref<1x128xf32, #tpu.memory_space<vmem>>, vector<1x128xf32>
    %8 = vector.broadcast %7 : vector<1x128xf32> to vector<8x128xf32>
    %9 = arith.addf %8, %1 : vector<8x128xf32>
    %10 = arith.addf %6, %9 : vector<8x128xf32>
    %c0_9 = arith.constant 0 : index
    %c0_10 = arith.constant 0 : index
    %11 = vector.load %arg4[%c0_9, %c0_10] : memref<8x32xbf16, #tpu.memory_space<vmem>>, vector<8x32xbf16>
    %c0_11 = arith.constant 0 : index
    %c0_12 = arith.constant 0 : index
    %12 = vector.load %arg5[%c0_11, %c0_12] : memref<32x128xbf16, #tpu.memory_space<vmem>>, vector<32x128xbf16>
    %cst_13 = arith.constant dense<0.000000e+00> : vector<8x128xf32>
    %13 = tpu.matmul %11, %12, %cst_13 {dimension_numbers = #tpu.dot_dimension_numbers<[1], [0], [0], [1], [0, 0, 1, 1], [], []>} : vector<8x32xbf16>, vector<32x128xbf16>, vector<8x128xf32> -> vector<8x128xf32>
    %c0_14 = arith.constant 0 : index
    %c0_15 = arith.constant 0 : index
    %14 = vector.load %arg6[%c0_14, %c0_15] : memref<1x128xf32, #tpu.memory_space<vmem>>, vector<1x128xf32>
    %15 = vector.broadcast %14 : vector<1x128xf32> to vector<8x128xf32>
    %16 = arith.addf %15, %1 : vector<8x128xf32>
    %17 = arith.addf %13, %16 : vector<8x128xf32>
    %18 = arith.addf %3, %1 : vector<8x128xf32>
    %19 = arith.mulf %10, %17 : vector<8x128xf32>
    %20 = arith.mulf %19, %18 : vector<8x128xf32>
    %cst_16 = arith.constant dense<0.000000e+00> : vector<128xf32>
    %21 = vector.multi_reduction <add>, %20, %cst_16 [0] : vector<8x128xf32> to vector<128xf32>
    %22 = vector.shape_cast %21 : vector<128xf32> to vector<1x128xf32>
    %cst_17 = arith.constant 8.000000e+00 : f32
    %23 = vector.broadcast %cst_17 : f32 to vector<1x128xf32>
    %24 = arith.divf %22, %23 : vector<1x128xf32>
    %25 = vector.broadcast %24 : vector<1x128xf32> to vector<8x128xf32>
    %26 = arith.subf %20, %25 : vector<8x128xf32>
    %27 = arith.mulf %26, %26 : vector<8x128xf32>
    %cst_18 = arith.constant dense<0.000000e+00> : vector<128xf32>
    %28 = vector.multi_reduction <add>, %27, %cst_18 [0] : vector<8x128xf32> to vector<128xf32>
    %29 = vector.shape_cast %28 : vector<128xf32> to vector<1x128xf32>
    %cst_19 = arith.constant 8.000000e+00 : f32
    %30 = vector.broadcast %cst_19 : f32 to vector<1x128xf32>
    %31 = arith.divf %29, %30 : vector<1x128xf32>
    %32 = vector.broadcast %24 : vector<1x128xf32> to vector<8x128xf32>
    %33 = arith.subf %20, %32 : vector<8x128xf32>
    %cst_20 = arith.constant 9.99999974E-6 : f32
    %34 = vector.broadcast %cst_20 : f32 to vector<1x128xf32>
    %35 = arith.addf %31, %34 : vector<1x128xf32>
    %36 = math.rsqrt %35 : vector<1x128xf32>
    %37 = vector.broadcast %36 : vector<1x128xf32> to vector<8x128xf32>
    %38 = arith.mulf %33, %37 : vector<8x128xf32>
    %c0_21 = arith.constant 0 : index
    %c0_22 = arith.constant 0 : index
    %39 = vector.load %arg9[%c0_21, %c0_22] : memref<1x128xf32, #tpu.memory_space<vmem>>, vector<1x128xf32>
    %40 = vector.broadcast %39 : vector<1x128xf32> to vector<8x128xf32>
    %41 = arith.mulf %38, %40 : vector<8x128xf32>
    %c0_23 = arith.constant 0 : index
    %c0_24 = arith.constant 0 : index
    %42 = vector.load %arg10[%c0_23, %c0_24] : memref<1x128xf32, #tpu.memory_space<vmem>>, vector<1x128xf32>
    %43 = vector.broadcast %42 : vector<1x128xf32> to vector<8x128xf32>
    %44 = arith.addf %41, %43 : vector<8x128xf32>
    %cst_25 = arith.constant 0.000000e+00 : f32
    %45 = vector.broadcast %cst_25 : f32 to vector<8x128xf32>
    %46 = arith.maximumf %44, %45 : vector<8x128xf32>
    %c0_26 = arith.constant 0 : index
    %c0_27 = arith.constant 0 : index
    %47 = vector.load %arg11[%c0_26, %c0_27] : memref<8x128xf32, #tpu.memory_space<vmem>>, vector<8x128xf32>
    tpu.vector_store %arg11[%c0_26, %c0_27], %46 {strides = array<i32>} : memref<8x128xf32, #tpu.memory_space<vmem>>, vector<8x128xf32>,
    return
  }
  func.func @transform_0(%arg0: i32) -> (i32, i32) {
    %c0_i32 = arith.constant 0 : i32
    %c0_i32_0 = arith.constant 0 : i32
    %c0_i32_1 = arith.constant 0 : i32
    return %c0_i32, %c0_i32_0 : i32, i32
  }
  func.func @transform_1(%arg0: i32) -> (i32, i32) {
    %c0_i32 = arith.constant 0 : i32
    %c0_i32_0 = arith.constant 0 : i32
    return %c0_i32, %arg0 : i32, i32
  }
  func.func @transform_2(%arg0: i32) -> (i32, i32) {
    %c0_i32 = arith.constant 0 : i32
    %c0_i32_0 = arith.constant 0 : i32
    return %c0_i32, %arg0 : i32, i32
  }
  func.func @transform_3(%arg0: i32) -> (i32, i32) {
    %c0_i32 = arith.constant 0 : i32
    %c0_i32_0 = arith.constant 0 : i32
    %c0_i32_1 = arith.constant 0 : i32
    return %c0_i32, %c0_i32_0 : i32, i32
  }
  func.func @transform_4(%arg0: i32) -> (i32, i32) {
    %c0_i32 = arith.constant 0 : i32
    %c0_i32_0 = arith.constant 0 : i32
    return %c0_i32, %arg0 : i32, i32
  }
  func.func @transform_5(%arg0: i32) -> (i32, i32) {
    %c0_i32 = arith.constant 0 : i32
    %c0_i32_0 = arith.constant 0 : i32
    return %c0_i32, %arg0 : i32, i32
  }
  func.func @transform_6(%arg0: i32) -> (i32, i32) {
    %c0_i32 = arith.constant 0 : i32
    %c0_i32_0 = arith.constant 0 : i32
    return %c0_i32, %arg0 : i32, i32
  }
  func.func @transform_7(%arg0: i32) -> (i32, i32) {
    %c0_i32 = arith.constant 0 : i32
    %c0_i32_0 = arith.constant 0 : i32
    return %c0_i32, %arg0 : i32, i32
  }
  func.func @transform_8(%arg0: i32) -> (i32, i32) {
    %c0_i32 = arith.constant 0 : i32
    %c0_i32_0 = arith.constant 0 : i32
    return %c0_i32, %arg0 : i32, i32
  }
  func.func @transform_9(%arg0: i32) -> (i32, i32) {
    %c0_i32 = arith.constant 0 : i32
    %c0_i32_0 = arith.constant 0 : i32
    return %c0_i32, %arg0 : i32, i32
  }
  func.func @transform_10(%arg0: i32) -> (i32, i32) {
    %c0_i32 = arith.constant 0 : i32
    %c0_i32_0 = arith.constant 0 : i32
    return %c0_i32, %arg0 : i32, i32
  }
}

</mosaic_0001>

<bundles_post_ra>
// kernel: tpu_custom_call.1
= control target key start
LH: loop header
LB: loop body
LE: loop exit
PB: predicated region body
PF: predicated region fallthrough
CT: control target
= control target key end

     0   :  { %15 = vsyncpa [#allocation3], 0  ;;  %s540_s0 = inlined_call_operand.hbm [shape: bf16[8,16], index: 0, kind: input, shape index: {}]   ;;  %s541_s1 = inlined_call_operand.hbm [shape: bf16[16,128], index: 1, kind: input, shape index: {}]   ;;  %s542_s2 = inlined_call_operand.vmem [shape: f32[1,128], index: 2, kind: input, shape index: {}]   ;;  %s543_s3 = inlined_call_operand.vmem [shape: bf16[8,32], index: 3, kind: input, shape index: {}]   ;;  %s544_s4 = inlined_call_operand.hbm [shape: bf16[32,128], index: 4, kind: input, shape index: {}]   ;;  %s545_s5 = inlined_call_operand.vmem [shape: f32[1,128], index: 5, kind: input, shape index: {}]   ;;  %s546_s6 = inlined_call_operand.vmem [shape: bf16[8,128], index: 6, kind: input, shape index: {}]   ;;  %s547_s7 = inlined_call_operand.vmem [shape: bf16[8,128], index: 7, kind: input, shape index: {}]   ;;  %s548_s8 = inlined_call_operand.vmem [shape: f32[1,128], index: 8, kind: input, shape index: {}]   ;;  %s549_s9 = inlined_call_operand.vmem [shape: f32[1,128], index: 9, kind: input, shape index: {}]   ;;  %s550_s10 = inlined_call_operand.hbm [shape: f32[8,128], index: 10, kind: output, shape index: {}]  }
   0x1   :  { %16 = vsyncpa [#allocation6], 0 }
   0x2   :  { %17 = vsyncpa [#allocation4], 0  ;;  %s402_s13 = smov [#allocation5]   ;;  %s308_s17 = scalar_lea.hbm %s541_s1, 128 }
   0x3   :  { %s33_s14 = sshll.u32 %s402_s13, 4  ;;  %p309_p0 = scmp.ne.s32.totalorder %s541_s1, %s308_s17  ;;  %s34_s14 = int_to_ptr.vmem [resolvable:$true] %s33_s14 }
   0x4   :  { %p312_p1 = scmp.lt.u32.totalorder %s308_s17, %s541_s1 }
   0x6   :  { %p314_p2 = pnand %p312_p1, %p309_p0 }
   0x8   :  { %317 = shalt.err (!%p314_p2)
}
   0x9   :  { %s318_s22 = scalar_lea.vmem %s34_s14, 128  ;;  %p323_p4 = scmp.lt.s32.totalorder %s34_s14, %s34_s14 }
   0xa   :  { %p319_p3 = scmp.ne.s32.totalorder %s34_s14, %s318_s22  ;;  %p324_p5 = scmp.lt.s32.totalorder %s318_s22, %s318_s22 }
   0xc   :  { %p325_p6 = por %p324_p5, %p323_p4 }
   0xe   :  { %p326_p7 = pnand %p325_p6, %p319_p3 }
  0x10   :  { %329 = shalt.err (!%p326_p7)
}
  0x11   :  { %s403_s23 = smov 64   ;;  %s404_s24 = smov 4  }
  0x12   :  { %39 = dma.hbm_to_vmem [thread:$0]  %s541_s1, 128, %s34_s14, [#allocation6], %s403_s23, %s403_s23, %s404_s24  }
  0x13   :  { %s405_s27 = smov [#allocation2]   ;;  %s406_s29 = smov [#allocation7]  }
  0x14   :  { %s24_s28 = sshll.u32 %s405_s27, 4  ;;  %s49_s30 = sshll.u32 %s406_s29, 4  ;;  %s25_s28 = int_to_ptr.vmem [resolvable:$true] %s24_s28  ;;  %s50_s30 = int_to_ptr.vmem [resolvable:$true] %s49_s30 }
  0x15   :  { %s330_s13 = scalar_lea.hbm %s540_s0, 64 }
  0x16   :  { %p331_p8 = scmp.ne.s32.totalorder %s540_s0, %s330_s13  ;;  %p334_p9 = scmp.lt.u32.totalorder %s330_s13, %s540_s0 }
  0x18   :  { %p336_p10 = pnand %p334_p9, %p331_p8 }
  0x1a   :  { %339 = shalt.err (!%p336_p10)
}
  0x1b   :  { %s340_s1 = scalar_lea.vmem %s25_s28, 64  ;;  %p345_p12 = scmp.lt.s32.totalorder %s25_s28, %s25_s28 }
  0x1c   :  { %p341_p11 = scmp.ne.s32.totalorder %s25_s28, %s340_s1  ;;  %p346_p13 = scmp.lt.s32.totalorder %s340_s1, %s340_s1 }
  0x1e   :  { %p347_p0 = por %p346_p13, %p345_p12 }
  0x20   :  { %p348_p1 = pnand %p347_p0, %p341_p11 }
  0x22   :  { %351 = shalt.err (!%p348_p1)
}
  0x23   :  { %27 = dma.hbm_to_vmem [thread:$0]  %s540_s0, 64, %s25_s28, [#allocation3]  }
  0x24   :  { %s352_s22 = scalar_lea.hbm %s544_s4, 256 }
  0x25   :  { %p353_p2 = scmp.ne.s32.totalorder %s544_s4, %s352_s22  ;;  %p356_p3 = scmp.lt.u32.totalorder %s352_s22, %s544_s4 }
  0x27   :  { %p358_p4 = pnand %p356_p3, %p353_p2 }
  0x29   :  { %361 = shalt.err (!%p358_p4)
}
  0x2a   :  { %s362_s11 = scalar_lea.vmem %s50_s30, 256  ;;  %p367_p6 = scmp.lt.s32.totalorder %s50_s30, %s50_s30 }
  0x2b   :  { %p363_p5 = scmp.ne.s32.totalorder %s50_s30, %s362_s11  ;;  %p368_p7 = scmp.lt.s32.totalorder %s362_s11, %s362_s11 }
  0x2d   :  { %p369_p8 = por %p368_p7, %p367_p6 }
  0x2f   :  { %p370_p9 = pnand %p369_p8, %p363_p5 }
  0x31   :  { %373 = shalt.err (!%p370_p9)
}
  0x32   :  { %55 = dma.hbm_to_vmem [thread:$0]  %s544_s4, 256, %s50_s30, [#allocation6], %s403_s23, %s403_s23, %s404_s24  }
  0x33   :  { %396 = dma.done.wait [#allocation3], 64  }
  0x34   :  { %397 = vsyncadd [#allocation3], 4294967232 }
  0x35   :  { %398 = dma.done.wait [#allocation6], 384  }
  0x36   :  { %399 = vsyncadd [#allocation6], 4294966912  ;;  %v407_v0 = vmov 0.0   ;;  %vm408_vm0 = vmmov 0   ;;  %v303_v1 = vld [vmem:[#allocation7] sm:$0xff]   ;;  %v304_v2 = vld [vmem:[#allocation5] sm:$0xff]  }
  0x37   :  { %287 = vmatprep.subr.bf16.mxu1 %v407_v0  ;;  %281 = vmatprep.subr.bf16.mxu0 %v407_v0  ;;  %v80_v3 = vld [vmem:[#allocation2] sm:$0xf]  ;;  %vm97_vm1 = vcmask 130048   ;;  %v305_v4 = vld [vmem:[#allocation7 + $0x8] sm:$0xff]   ;;  %vm166_vm2 = vcmask 261120  }
  0x38   :  { %283 = vmatprep.mubr.msk.bf16.mxu0 %vm408_vm0, %v407_v0  ;;  %291 = vmatprep.mubr.msk.bf16.mxu1 %vm408_vm0, %v407_v0  ;;  %v141_v5 = vld [vmem:[%s543_s3] sm:$0xf] }
  0x39   :  { %288 = vmatpush3.bf16.msra.mxu1 %v303_v1  ;;  %282 = vmatpush3.bf16.msra.mxu0 %v304_v2  ;;  %v76_v6 = vld [vmem:[%s547_s7] sm:$0xf]  ;;  %s409_s7 = smov [#allocation8]  }
  0x3a   :  { %289 = vmatprep.subr.bf16.mxu1 %v407_v0  ;;  %v77_v7 = vunpack.c.l.bf16 %v76_v6  ;;  %v267_v8 = vld [vmem:[%s542_s2] ss:$0 sm:$0xff]  ;;  %s257_s1 = sshll.u32 %s409_s7, 4  ;;  %s258_s1 = int_to_ptr.vmem [resolvable:$true] %s257_s1 }
  0x3b   :  { %v78_v9 = vld [vmem:[%s546_s6] sm:$0xf]  ;;  %s374_s14 = scalar_lea.vmem %s258_s1, 128  ;;  %p379_p11 = scmp.lt.s32.totalorder %s258_s1, %s258_s1 }
  0x3c   :  { %284 = vmatmul.mubr.msk.bf16.vlgmr.msra.gmra.mrb[0].mxu0 %vm97_vm1, %v80_v3  ;;  %v270_v10 = vld [vmem:[%s545_s5] ss:$0 sm:$0xff]  ;;  %v90_v11 = vadd.f32 %v267_v8, %v77_v7  ;;  %v79_v13 = vunpack.c.l.bf16 %v78_v9  ;;  %p375_p10 = scmp.ne.s32.totalorder %s258_s1, %s374_s14  ;;  %p380_p12 = scmp.lt.s32.totalorder %s374_s14, %s374_s14 }
  0x3d   :  { %290 = vmatpush3.bf16.msra.mxu1 %v305_v4  ;;  %v153_v14 = vadd.f32 %v270_v10, %v77_v7  ;;  %v274_v45 = vld [vmem:[%s548_s8] ss:$0 sm:$0xff] }
  0x3e   :  { %v210_v21 = vadd.f32 %v79_v13, %v77_v7  ;;  %v275_v47 = vld [vmem:[%s549_s9] ss:$0 sm:$0xff]  ;;  %p381_p13 = por %p380_p12, %p379_p11 }
  0x40   :  { %292 = vmatmul.mubr.msk.bf16.vlgmr.msra.gmra.mrb[0].mxu1 %vm166_vm2, %v141_v5  ;;  %p382_p0 = pnand %p381_p13, %p375_p10 }
 0x10f   :  { %v135_v12 = vpop.f32.mrb[0].mxu0 }
 0x110   :  { %v285_v15 = vpop.f32.mrb[1].mxu0  ;;  %v136_v16 = vadd.f32 %v135_v12, %v90_v11 }
 0x111   :  { %v138_v17 = vpop.f32.mrb[2].mxu0 }
 0x112   :  { %v286_v18 = vpop.f32.mrb[3].mxu0 }
 0x113   :  { %v204_v19 = vpop.f32.mrb[0].mxu1 }
 0x114   :  { %v205_v20 = vadd.f32 %v204_v19, %v153_v14  ;;  %v293_v22 = vpop.f32.mrb[1].mxu1 }
 0x115   :  { %v207_v23 = vpop.f32.mrb[2].mxu1 }
 0x116   :  { %v211_v24 = vmul.f32 %v205_v20, %v136_v16  ;;  %v294_v25 = vpop.f32.mrb[3].mxu1 }
 0x118   :  { %v212_v26 = vmul.f32 %v211_v24, %v210_v21 }
 0x11a   :  { %v213_v27 = vrot.slane %v212_v26, 4 }
 0x11c   :  { %v214_v28 = vadd.f32 %v213_v27, %v212_v26 }
 0x11e   :  { %v215_v29 = vrot.slane %v214_v28, 2 }
 0x120   :  { %v216_v30 = vadd.f32 %v215_v29, %v214_v28 }
 0x122   :  { %v217_v31 = vrot.slane %v216_v30, 1 }
 0x124   :  { %v218_v32 = vadd.f32 %v217_v31, %v216_v30 }
 0x126   :  { %v220_v33 = vmul.f32 0.125, %v218_v32 }
 0x128   :  { %v221_v34 = vsub.f32 %v212_v26, %v220_v33 }
 0x12a   :  { %v222_v35 = vmul.f32 %v221_v34, %v221_v34 }
 0x12c   :  { %v223_v36 = vrot.slane %v222_v35, 4 }
 0x12e   :  { %v224_v37 = vadd.f32 %v223_v36, %v222_v35 }
 0x130   :  { %v225_v38 = vrot.slane %v224_v37, 2 }
 0x132   :  { %v226_v39 = vadd.f32 %v225_v38, %v224_v37 }
 0x134   :  { %v227_v40 = vrot.slane %v226_v39, 1 }
 0x136   :  { %v228_v41 = vadd.f32 %v227_v40, %v226_v39 }
 0x138   :  { %v229_v42 = vmul.f32 0.125, %v228_v41 }
 0x13a   :  { %v230_v43 = vadd.f32 1e-05, %v229_v42 }
 0x13c   :  { %306 = vrsqrt.f32 %v230_v43 }
 0x146   :  { %v307_v44 = vpop.eup %306 }
 0x147   :  { %v232_v46 = vmul.f32 %v307_v44, %v221_v34 }
 0x149   :  { %v240_v48 = vmul.f32 %v274_v45, %v232_v46 }
 0x14b   :  { %v248_v49 = vadd.f32 %v275_v47, %v240_v48 }
 0x14d   :  { %v249_v50 = vmax.f32 %v248_v49, 0.0 }
 0x14f   :  { %250 = vst [vmem:[#allocation8] sm:$0xff] %v249_v50 }
 0x150   :  { %385 = shalt.err (!%p382_p0)
}
 0x151   :  { %s386_s20 = scalar_lea.hbm %s550_s10, 128 }
 0x152   :  { %p387_p1 = scmp.ne.s32.totalorder %s550_s10, %s386_s20  ;;  %p390_p2 = scmp.lt.u32.totalorder %s386_s20, %s550_s10 }
 0x154   :  { %p392_p3 = pnand %p390_p2, %p387_p1 }
 0x156   :  { %395 = shalt.err (!%p392_p3)
}
 0x157   :  { %260 = dma.vmem_to_hbm [thread:$0]  %s258_s1, 128, %s550_s10, [#allocation4]  }
 0x158   :  { %400 = dma.done.wait [#allocation4], 128  }
 0x159   :  { %401 = vsyncadd [#allocation4], 4294967168 }
 0x15a   :  { %264 = vsyncpa [#allocation3], 1 }
 0x15b   :  { %265 = vsyncpa [#allocation6], 1 }
 0x15c   :  { %266 = vsyncpa [#allocation4], 1 }

</bundles_post_ra>
